<compile_context>
chip_gen: v7x
topology: tpu7x:2x2x1
jax: 0.10.0
libtpu: 0.0.40
codegen_flags: <defaults>
</compile_context>

<pallas_src>
import functools
from collections import OrderedDict

import jax
import jax.numpy as jnp
from jax.experimental import pallas as pl
from jax.experimental.pallas import tpu as pltpu


def _round_up(n: int, m: int) -> int:
    return ((n + m - 1) // m) * m


# ----------------------------------------------------------------------------
# Fused Pallas kernel: the whole circulation loop in one kernel invocation.
# ----------------------------------------------------------------------------
def _tourbillon_kernel(
    x_ref, we_ref, be_ref, wd_ref, bd_ref,              # inputs (VMEM)
    enc_tgt_ref, enc_out_ref, dec_tgt_ref, dec_out_ref,  # outputs (VMEM)
    *, num_circ: int, target_circ: int, output_circ: int, use_bf16: bool,
):
    x = x_ref[...]
    we = we_ref[...]
    be = be_ref[...]
    wd = wd_ref[...]
    bd = bd_ref[...]
    mm_dtype = jnp.bfloat16 if use_bf16 else jnp.float32

    for i in range(num_circ):  # static unroll — activation stays in vregs/VMEM
        # encoder: relu(x @ we + be)  (MXU, f32 accumulate; elementwise in f32)
        h = jnp.dot(x.astype(mm_dtype), we.astype(mm_dtype),
                    preferred_element_type=jnp.float32) + be
        h = jnp.maximum(h, 0.0)
        if i == output_circ:
            enc_out_ref[...] = h.astype(enc_out_ref.dtype)
        if i == target_circ:
            enc_tgt_ref[...] = h.astype(enc_tgt_ref.dtype)

        # decoder: sigmoid(h @ wd + bd)
        y = jnp.dot(h.astype(mm_dtype), wd.astype(mm_dtype),
                    preferred_element_type=jnp.float32) + bd
        y = jax.nn.sigmoid(y)
        if i == output_circ:
            dec_out_ref[...] = y.astype(dec_out_ref.dtype)
        if i == target_circ:
            dec_tgt_ref[...] = y.astype(dec_tgt_ref.dtype)

        x = y  # feed back into the next circulation (never leaves VMEM)


@functools.partial(
    jax.jit,
    static_argnames=("num_circ", "target_circ", "output_circ", "use_bf16"),
)
def _tourbillon_forward(x, we, be, wd, bd, *, num_circ, target_circ,
                        output_circ, use_bf16):
    """Single fused pallas_call over padded (lane-dense) operands."""
    B, D = x.shape
    H = we.shape[1]

    kernel = functools.partial(
        _tourbillon_kernel,
        num_circ=num_circ,
        target_circ=target_circ,
        output_circ=output_circ,
        use_bf16=use_bf16,
    )

    vmem = lambda: pl.BlockSpec(memory_space=pltpu.MemorySpace.VMEM)
    out_shapes = (
        jax.ShapeDtypeStruct((B, H), jnp.float32),  # enc_target
        jax.ShapeDtypeStruct((B, H), jnp.float32),  # enc_output
        jax.ShapeDtypeStruct((B, D), jnp.float32),  # dec_target
        jax.ShapeDtypeStruct((B, D), jnp.float32),  # dec_output
    )
    return pl.pallas_call(
        kernel,
        out_shape=out_shapes,
        in_specs=[vmem() for _ in range(5)],
        out_specs=tuple(vmem() for _ in range(4)),
    )(x, we, be, wd, bd)


# ----------------------------------------------------------------------------
# Tourbillon building block (forward only)
# ----------------------------------------------------------------------------
class TourbillonBuildingBlockBase:
    """Circular autoencoder forward pass mirroring the PyTorch reference."""

    def __init__(
        self,
        encoder_params,          # (w_enc [D_in, H], b_enc [1, H])
        decoder_params,          # (w_dec [H, D_in], b_dec [1, D_in])
        num_circulations: int = 2,
        target_circulation: int = 0,
        output_circulation: int = 1,
        use_bf16_matmul: bool = False,   # bf16 MXU inputs on v6e/v7x at scale
    ):
        w_enc, b_enc = encoder_params
        w_dec, b_dec = decoder_params
        self.d_in, self.hidden = w_enc.shape
        assert w_dec.shape == (self.hidden, self.d_in)
        assert b_enc.shape == (1, self.hidden)
        assert b_dec.shape == (1, self.d_in)

        self.num_circulations = num_circulations
        self.target_circulation = target_circulation
        self.output_circulation = output_circulation
        self.use_bf16_matmul = use_bf16_matmul

        # Zero-pad feature dims up to multiples of 128 (lane-dense stores,
        # full-width MXU N).  Zero padding is value-preserving (see header).
        self.d_in_p = _round_up(max(self.d_in, 1), 128)
        self.h_p = _round_up(max(self.hidden, 1), 128)
        self.w_enc = jnp.pad(
            w_enc.astype(jnp.float32),
            ((0, self.d_in_p - self.d_in), (0, self.h_p - self.hidden)))
        self.b_enc = jnp.pad(
            b_enc.astype(jnp.float32), ((0, 0), (0, self.h_p - self.hidden)))
        self.w_dec = jnp.pad(
            w_dec.astype(jnp.float32),
            ((0, self.h_p - self.hidden), (0, self.d_in_p - self.d_in)))
        self.b_dec = jnp.pad(
            b_dec.astype(jnp.float32), ((0, 0), (0, self.d_in_p - self.d_in)))

    def __call__(self, x: jax.Array) -> "OrderedDict[str, jax.Array]":
        B, D = x.shape
        assert D == self.d_in, (D, self.d_in)
        b_p = _round_up(max(B, 1), 8)   # sublane-align the batch
        x_p = jnp.pad(x.astype(jnp.float32),
                      ((0, b_p - B), (0, self.d_in_p - D)))

        enc_t, enc_o, dec_t, dec_o = _tourbillon_forward(
            x_p, self.w_enc, self.b_enc, self.w_dec, self.b_dec,
            num_circ=self.num_circulations,
            target_circ=self.target_circulation,
            output_circ=self.output_circulation,
            use_bf16=self.use_bf16_matmul,
        )

        # Strip padding; targets get stop_gradient to mirror x.detach().
        enc_t = jax.lax.stop_gradient(enc_t[:B, :self.hidden])
        enc_o = enc_o[:B, :self.hidden]
        dec_t = jax.lax.stop_gradient(dec_t[:B, :self.d_in])
        dec_o = dec_o[:B, :self.d_in]

        # Reproduce the PyTorch key-insertion order exactly.
        outputs = OrderedDict()
        for i in range(self.num_circulations):
            if i == self.output_circulation:
                outputs["enc_output"] = enc_o
            if i == self.target_circulation:
                outputs["enc_target"] = enc_t
            if i == self.output_circulation:
                outputs["dec_output"] = dec_o
            if i == self.target_circulation:
                outputs["dec_target"] = dec_t
        return outputs


# ----------------------------------------------------------------------------
# Pure-JAX reference (no Pallas) for a correctness sanity check
# ----------------------------------------------------------------------------
def _reference_forward(x, enc_params, dec_params, num_circ, target_circ, output_circ):
    we, be = enc_params
    wd, bd = dec_params
    outputs = OrderedDict()
    for i in range(num_circ):
        x = jnp.maximum(x @ we + be, 0.0)
        if i == output_circ:
            outputs["enc_output"] = x
        if i == target_circ:
            outputs["enc_target"] = x
        x = jax.nn.sigmoid(x @ wd + bd)
        if i == output_circ:
            outputs["dec_output"] = x
        if i == target_circ:
            outputs["dec_target"] = x
    return outputs


if __name__ == "__main__":
    # Small, deterministic shapes: batch=8, input features=128, hidden=32.
    B, D_IN, H = 8, 128, 32

    key = jax.random.PRNGKey(0)
    kx, kwe, kbe, kwd, kbd = jax.random.split(key, 5)

    x = jax.random.normal(kx, (B, D_IN), dtype=jnp.float32)

    # Deterministic parameter init (PyTorch-Linear-style uniform bounds).
    bound_e = 1.0 / (D_IN ** 0.5)
    w_enc = jax.random.uniform(kwe, (D_IN, H), minval=-bound_e, maxval=bound_e,
                               dtype=jnp.float32)
    b_enc = jax.random.uniform(kbe, (1, H), minval=-bound_e, maxval=bound_e,
                               dtype=jnp.float32)

    bound_d = 1.0 / (H ** 0.5)
    w_dec = jax.random.uniform(kwd, (H, D_IN), minval=-bound_d, maxval=bound_d,
                               dtype=jnp.float32)
    b_dec = jax.random.uniform(kbd, (1, D_IN), minval=-bound_d, maxval=bound_d,
                               dtype=jnp.float32)

    block = TourbillonBuildingBlockBase(
        encoder_params=(w_enc, b_enc),
        decoder_params=(w_dec, b_dec),
        num_circulations=2,
        target_circulation=0,
        output_circulation=1,
        use_bf16_matmul=False,   # keep f32 for tight numerics at tiny shapes
    )

    out = block(x)
    jax.block_until_ready(out)

    # Sanity check against pure-JAX reference.
    ref = _reference_forward(x, (w_enc, b_enc), (w_dec, b_dec), 2, 0, 1)
    assert list(out.keys()) == list(ref.keys()), (list(out.keys()), list(ref.keys()))
    for k in ("enc_target", "enc_output", "dec_target", "dec_output"):
        assert out[k].shape == ref[k].shape, (k, out[k].shape, ref[k].shape)
        assert jnp.allclose(out[k], ref[k], atol=1e-5, rtol=1e-5), k

    print("KERNEL_OK")
</pallas_src>

<mosaic_0001>
module attributes {stable_mosaic.version = 11 : i64} {
  func.func @_tourbillon_kernel(%arg0: memref<8x128xf32, #tpu.memory_space<vmem>>, %arg1: memref<128x128xf32, #tpu.memory_space<vmem>>, %arg2: memref<1x128xf32, #tpu.memory_space<vmem>>, %arg3: memref<128x128xf32, #tpu.memory_space<vmem>>, %arg4: memref<1x128xf32, #tpu.memory_space<vmem>>, %arg5: memref<8x128xf32, #tpu.memory_space<vmem>>, %arg6: memref<8x128xf32, #tpu.memory_space<vmem>>, %arg7: memref<8x128xf32, #tpu.memory_space<vmem>>, %arg8: memref<8x128xf32, #tpu.memory_space<vmem>>) attributes {dimension_semantics = [], scalar_prefetch = 0 : i64, scratch_operands = 0 : i64, tpu.core_type = #tpu.core_type<tc>} {
    %c0 = arith.constant 0 : index
    %c0_0 = arith.constant 0 : index
    %0 = vector.load %arg0[%c0, %c0_0] : memref<8x128xf32, #tpu.memory_space<vmem>>, vector<8x128xf32>
    %c0_1 = arith.constant 0 : index
    %c0_2 = arith.constant 0 : index
    %1 = vector.load %arg1[%c0_1, %c0_2] : memref<128x128xf32, #tpu.memory_space<vmem>>, vector<128x128xf32>
    %c0_3 = arith.constant 0 : index
    %c0_4 = arith.constant 0 : index
    %2 = vector.load %arg2[%c0_3, %c0_4] : memref<1x128xf32, #tpu.memory_space<vmem>>, vector<1x128xf32>
    %c0_5 = arith.constant 0 : index
    %c0_6 = arith.constant 0 : index
    %3 = vector.load %arg3[%c0_5, %c0_6] : memref<128x128xf32, #tpu.memory_space<vmem>>, vector<128x128xf32>
    %c0_7 = arith.constant 0 : index
    %c0_8 = arith.constant 0 : index
    %4 = vector.load %arg4[%c0_7, %c0_8] : memref<1x128xf32, #tpu.memory_space<vmem>>, vector<1x128xf32>
    %cst = arith.constant dense<0.000000e+00> : vector<8x128xf32>
    %5 = tpu.matmul %0, %1, %cst {dimension_numbers = #tpu.dot_dimension_numbers<[1], [0], [0], [1], [0, 0, 1, 1], [], []>} : vector<8x128xf32>, vector<128x128xf32>, vector<8x128xf32> -> vector<8x128xf32>
    %6 = vector.broadcast %2 : vector<1x128xf32> to vector<8x128xf32>
    %7 = arith.addf %5, %6 : vector<8x128xf32>
    %cst_9 = arith.constant 0.000000e+00 : f32
    %8 = vector.broadcast %cst_9 : f32 to vector<8x128xf32>
    %9 = arith.maximumf %7, %8 : vector<8x128xf32>
    %c0_10 = arith.constant 0 : index
    %c0_11 = arith.constant 0 : index
    %10 = vector.load %arg5[%c0_10, %c0_11] : memref<8x128xf32, #tpu.memory_space<vmem>>, vector<8x128xf32>
    tpu.vector_store %arg5[%c0_10, %c0_11], %9 {strides = array<i32>} : memref<8x128xf32, #tpu.memory_space<vmem>>, vector<8x128xf32>,
    %cst_12 = arith.constant dense<0.000000e+00> : vector<8x128xf32>
    %11 = tpu.matmul %9, %3, %cst_12 {dimension_numbers = #tpu.dot_dimension_numbers<[1], [0], [0], [1], [0, 0, 1, 1], [], []>} : vector<8x128xf32>, vector<128x128xf32>, vector<8x128xf32> -> vector<8x128xf32>
    %12 = vector.broadcast %4 : vector<1x128xf32> to vector<8x128xf32>
    %13 = arith.addf %11, %12 : vector<8x128xf32>
    %14 = arith.negf %13 : vector<8x128xf32>
    %15 = math.exp %14 : vector<8x128xf32>
    %cst_13 = arith.constant 1.000000e+00 : f32
    %16 = vector.broadcast %cst_13 : f32 to vector<8x128xf32>
    %17 = arith.addf %16, %15 : vector<8x128xf32>
    %18 = arith.divf %16, %17 : vector<8x128xf32>
    %c0_14 = arith.constant 0 : index
    %c0_15 = arith.constant 0 : index
    %19 = vector.load %arg7[%c0_14, %c0_15] : memref<8x128xf32, #tpu.memory_space<vmem>>, vector<8x128xf32>
    tpu.vector_store %arg7[%c0_14, %c0_15], %18 {strides = array<i32>} : memref<8x128xf32, #tpu.memory_space<vmem>>, vector<8x128xf32>,
    %cst_16 = arith.constant dense<0.000000e+00> : vector<8x128xf32>
    %20 = tpu.matmul %18, %1, %cst_16 {dimension_numbers = #tpu.dot_dimension_numbers<[1], [0], [0], [1], [0, 0, 1, 1], [], []>} : vector<8x128xf32>, vector<128x128xf32>, vector<8x128xf32> -> vector<8x128xf32>
    %21 = vector.broadcast %2 : vector<1x128xf32> to vector<8x128xf32>
    %22 = arith.addf %20, %21 : vector<8x128xf32>
    %cst_17 = arith.constant 0.000000e+00 : f32
    %23 = vector.broadcast %cst_17 : f32 to vector<8x128xf32>
    %24 = arith.maximumf %22, %23 : vector<8x128xf32>
    %c0_18 = arith.constant 0 : index
    %c0_19 = arith.constant 0 : index
    %25 = vector.load %arg6[%c0_18, %c0_19] : memref<8x128xf32, #tpu.memory_space<vmem>>, vector<8x128xf32>
    tpu.vector_store %arg6[%c0_18, %c0_19], %24 {strides = array<i32>} : memref<8x128xf32, #tpu.memory_space<vmem>>, vector<8x128xf32>,
    %cst_20 = arith.constant dense<0.000000e+00> : vector<8x128xf32>
    %26 = tpu.matmul %24, %3, %cst_20 {dimension_numbers = #tpu.dot_dimension_numbers<[1], [0], [0], [1], [0, 0, 1, 1], [], []>} : vector<8x128xf32>, vector<128x128xf32>, vector<8x128xf32> -> vector<8x128xf32>
    %27 = vector.broadcast %4 : vector<1x128xf32> to vector<8x128xf32>
    %28 = arith.addf %26, %27 : vector<8x128xf32>
    %29 = arith.negf %28 : vector<8x128xf32>
    %30 = math.exp %29 : vector<8x128xf32>
    %cst_21 = arith.constant 1.000000e+00 : f32
    %31 = vector.broadcast %cst_21 : f32 to vector<8x128xf32>
    %32 = arith.addf %31, %30 : vector<8x128xf32>
    %33 = arith.divf %31, %32 : vector<8x128xf32>
    %c0_22 = arith.constant 0 : index
    %c0_23 = arith.constant 0 : index
    %34 = vector.load %arg8[%c0_22, %c0_23] : memref<8x128xf32, #tpu.memory_space<vmem>>, vector<8x128xf32>
    tpu.vector_store %arg8[%c0_22, %c0_23], %33 {strides = array<i32>} : memref<8x128xf32, #tpu.memory_space<vmem>>, vector<8x128xf32>,
    return
  }
}

</mosaic_0001>

<bundles_post_ra>
// kernel: _tourbillon_forward.1
= control target key start
LH: loop header
LB: loop body
LE: loop exit
PB: predicated region body
PF: predicated region fallthrough
CT: control target
= control target key end

     0   :  { %14 = vsyncpa [#allocation3], 0  ;;  %s1185_s0 = inlined_call_operand.hbm [shape: f32[8,128], index: 0, kind: input, shape index: {}]   ;;  %s1186_s1 = inlined_call_operand.hbm [shape: f32[128,128], index: 1, kind: input, shape index: {}]   ;;  %s1187_s2 = inlined_call_operand.vmem [shape: f32[1,128], index: 2, kind: input, shape index: {}]   ;;  %s1188_s3 = inlined_call_operand.hbm [shape: f32[128,128], index: 3, kind: input, shape index: {}]   ;;  %s1189_s4 = inlined_call_operand.vmem [shape: f32[1,128], index: 4, kind: input, shape index: {}]   ;;  %s1190_s5 = inlined_call_operand.hbm [shape: f32[8,128], index: 5, kind: output, shape index: {0}]   ;;  %s1191_s6 = inlined_call_operand.hbm [shape: f32[8,128], index: 6, kind: output, shape index: {1}]   ;;  %s1192_s7 = inlined_call_operand.hbm [shape: f32[8,128], index: 7, kind: output, shape index: {2}]   ;;  %s1193_s8 = inlined_call_operand.hbm [shape: f32[8,128], index: 8, kind: output, shape index: {3}]  }
   0x1   :  { %15 = vsyncpa [#allocation6], 0 }
   0x2   :  { %16 = vsyncpa [#allocation4], 0 }
   0x3   :  { %17 = vsyncpa [#allocation10], 0 }
   0x4   :  { %18 = vsyncpa [#allocation13], 0  ;;  %s960_s27 = smov [#allocation5]   ;;  %s796_s9 = scalar_lea.hbm %s1186_s1, 2048 }
   0x5   :  { %s34_s28 = sshll.u32 %s960_s27, 4  ;;  %p797_p0 = scmp.ne.s32.totalorder %s1186_s1, %s796_s9  ;;  %s35_s28 = int_to_ptr.vmem [resolvable:$true] %s34_s28 }
   0x6   :  { %p800_p1 = scmp.lt.u32.totalorder %s796_s9, %s1186_s1 }
   0x8   :  { %p802_p2 = pnand %p800_p1, %p797_p0 }
   0xa   :  { %805 = shalt.err (!%p802_p2)
}
   0xb   :  { %s806_s14 = scalar_lea.vmem %s35_s28, 2048  ;;  %p811_p4 = scmp.lt.s32.totalorder %s35_s28, %s35_s28 }
   0xc   :  { %p807_p3 = scmp.ne.s32.totalorder %s35_s28, %s806_s14  ;;  %p812_p5 = scmp.lt.s32.totalorder %s806_s14, %s806_s14 }
   0xe   :  { %p813_p6 = por %p812_p5, %p811_p4 }
  0x10   :  { %p814_p7 = pnand %p813_p6, %p807_p3 }
  0x12   :  { %817 = shalt.err (!%p814_p7)
}
  0x13   :  { %s961_s15 = smov 128   ;;  %s962_s16 = smov 8  }
  0x14   :  { %40 = dma.hbm_to_vmem [thread:$0]  %s1186_s1, 2048, %s35_s28, [#allocation6], %s961_s15, %s961_s15, %s962_s16  }
  0x15   :  { %s963_s19 = smov [#allocation2]   ;;  %s964_s21 = smov [#allocation7]  }
  0x16   :  { %s25_s20 = sshll.u32 %s963_s19, 4  ;;  %s48_s22 = sshll.u32 %s964_s21, 4  ;;  %s26_s20 = int_to_ptr.vmem [resolvable:$true] %s25_s20  ;;  %s49_s22 = int_to_ptr.vmem [resolvable:$true] %s48_s22 }
  0x17   :  { %s818_s25 = scalar_lea.hbm %s1185_s0, 128 }
  0x18   :  { %p819_p8 = scmp.ne.s32.totalorder %s1185_s0, %s818_s25  ;;  %p822_p9 = scmp.lt.u32.totalorder %s818_s25, %s1185_s0 }
  0x1a   :  { %p824_p10 = pnand %p822_p9, %p819_p8 }
  0x1c   :  { %827 = shalt.err (!%p824_p10)
}
  0x1d   :  { %s828_s1 = scalar_lea.vmem %s26_s20, 128  ;;  %p833_p12 = scmp.lt.s32.totalorder %s26_s20, %s26_s20 }
  0x1e   :  { %p829_p11 = scmp.ne.s32.totalorder %s26_s20, %s828_s1  ;;  %p834_p13 = scmp.lt.s32.totalorder %s828_s1, %s828_s1 }
  0x20   :  { %p835_p0 = por %p834_p13, %p833_p12 }
  0x22   :  { %p836_p1 = pnand %p835_p0, %p829_p11 }
  0x24   :  { %839 = shalt.err (!%p836_p1)
}
  0x25   :  { %28 = dma.hbm_to_vmem [thread:$0]  %s1185_s0, 128, %s26_s20, [#allocation3]  }
  0x26   :  { %s840_s12 = scalar_lea.hbm %s1188_s3, 2048 }
  0x27   :  { %p841_p2 = scmp.ne.s32.totalorder %s1188_s3, %s840_s12  ;;  %p844_p3 = scmp.lt.u32.totalorder %s840_s12, %s1188_s3 }
  0x29   :  { %p846_p4 = pnand %p844_p3, %p841_p2 }
  0x2b   :  { %849 = shalt.err (!%p846_p4)
}
  0x2c   :  { %s850_s19 = scalar_lea.vmem %s49_s22, 2048  ;;  %p855_p6 = scmp.lt.s32.totalorder %s49_s22, %s49_s22 }
  0x2d   :  { %p851_p5 = scmp.ne.s32.totalorder %s49_s22, %s850_s19  ;;  %p856_p7 = scmp.lt.s32.totalorder %s850_s19, %s850_s19 }
  0x2f   :  { %p857_p8 = por %p856_p7, %p855_p6 }
  0x31   :  { %p858_p9 = pnand %p857_p8, %p851_p5 }
  0x33   :  { %861 = shalt.err (!%p858_p9)
}
  0x34   :  { %54 = dma.hbm_to_vmem [thread:$0]  %s1188_s3, 2048, %s49_s22, [#allocation6], %s961_s15, %s961_s15, %s962_s16  }
  0x35   :  { %950 = dma.done.wait [#allocation3], 128  }
  0x36   :  { %951 = vsyncadd [#allocation3], 4294967168 }
  0x37   :  { %952 = dma.done.wait [#allocation6], 4096  }
  0x38   :  { %953 = vsyncadd [#allocation6], 4294963200  ;;  %v965_v0 = vmov 0.0|0.0   ;;  %vm966_vm0 = vmmov 0   ;;  %v967_v1 = vmov 0.0   ;;  %v67_v2 = vld [vmem:[#allocation5] sm:$0xff] }
  0x39   :  { %680 = vmatprep.subr.bf16.mxu0 %v965_v0  ;;  %572 = vmatprep.mubr.msk.f32.mxu0 %vm966_vm0, %v967_v1  ;;  %v68_v3 = vld [vmem:[#allocation5 + $0x8] sm:$0xff]  ;;  %v69_v4 = vld [vmem:[#allocation5 + $0x10] sm:$0xff]  ;;  %v70_v6 = vld [vmem:[#allocation5 + $0x18] sm:$0xff]  ;;  %s969_s22 = smov [#allocation8]  }
  0x3a   :  { %704 = vmatprep.subr.bf16.mxu1 %v965_v0  ;;  %607 = vmatprep.mubr.msk.f32.mxu1 %vm966_vm0, %v967_v1  ;;  %v1065_v5 = vpack.c.bf16 %v68_v3, %v67_v2  ;;  %v1068_v7 = vpack.c.bf16 %v70_v6, %v69_v4  ;;  %v71_v8 = vld [vmem:[#allocation5 + $0x20] sm:$0xff]  ;;  %v72_v9 = vld [vmem:[#allocation5 + $0x28] sm:$0xff]  ;;  %v86_v12 = vld [vmem:[#allocation7 + $0x10] sm:$0xff]  ;;  %s417_s23 = sshll.u32 %s969_s22, 4  ;;  %s418_s23 = int_to_ptr.vmem [resolvable:$true] %s417_s23 }
  0x3b   :  { %v84_v10 = vld [vmem:[#allocation7] sm:$0xff]  ;;  %v85_v11 = vld [vmem:[#allocation7 + $0x8] sm:$0xff]  ;;  %v87_v13 = vld [vmem:[#allocation7 + $0x18] sm:$0xff]  ;;  %v1072_v14 = vpack.c.bf16 %v72_v9, %v71_v8 }
  0x3c   :  { %682 = vmatpush3.bf16.msra.mxu0 %v1065_v5  ;;  %v1074_v15 = vpack.c.bf16 %v85_v11, %v84_v10  ;;  %v73_v16 = vld [vmem:[#allocation5 + $0x30] sm:$0xff]  ;;  %v74_v17 = vld [vmem:[#allocation5 + $0x38] sm:$0xff]  ;;  %v1078_v18 = vpack.c.bf16 %v87_v13, %v86_v12  ;;  %v88_v19 = vld [vmem:[#allocation7 + $0x20] sm:$0xff] }
  0x3d   :  { %683 = vmatprep.subr.bf16.mxu0 %v965_v0  ;;  %v89_v20 = vld [vmem:[#allocation7 + $0x28] sm:$0xff]  ;;  %v690_v21 = vpack.c.bf16 %v74_v17, %v73_v16  ;;  %v75_v22 = vld [vmem:[#allocation5 + $0x40] sm:$0xff]  ;;  %v90_v25 = vld [vmem:[#allocation7 + $0x30] sm:$0xff] }
  0x3e   :  { %706 = vmatpush3.bf16.msra.mxu1 %v1074_v15  ;;  %v76_v23 = vld [vmem:[#allocation5 + $0x48] sm:$0xff]  ;;  %v1084_v24 = vpack.c.bf16 %v89_v20, %v88_v19  ;;  %v91_v26 = vld [vmem:[#allocation7 + $0x38] sm:$0xff]  ;;  %v77_v28 = vld [vmem:[#allocation5 + $0x50] sm:$0xff] }
  0x3f   :  { %707 = vmatprep.subr.bf16.mxu1 %v965_v0  ;;  %v693_v27 = vpack.c.bf16 %v76_v23, %v75_v22  ;;  %v78_v29 = vld [vmem:[#allocation5 + $0x58] sm:$0xff]  ;;  %v1089_v30 = vpack.c.bf16 %v91_v26, %v90_v25  ;;  %v92_v31 = vld [vmem:[#allocation7 + $0x40] sm:$0xff]  ;;  %v93_v32 = vld [vmem:[#allocation7 + $0x48] sm:$0xff] }
  0x40   :  { %685 = vmatpush3.bf16.msra.mxu0 %v1068_v7  ;;  %v696_v33 = vpack.c.bf16 %v78_v29, %v77_v28  ;;  %v79_v34 = vld [vmem:[#allocation5 + $0x60] sm:$0xff]  ;;  %v80_v35 = vld [vmem:[#allocation5 + $0x68] sm:$0xff]  ;;  %v717_v36 = vpack.c.bf16 %v93_v32, %v92_v31  ;;  %v94_v37 = vld [vmem:[#allocation7 + $0x50] sm:$0xff] }
  0x41   :  { %686 = vmatprep.subr.bf16.mxu0 %v965_v0  ;;  %v95_v38 = vld [vmem:[#allocation7 + $0x58] sm:$0xff]  ;;  %v699_v39 = vpack.c.bf16 %v80_v35, %v79_v34  ;;  %v81_v40 = vld [vmem:[#allocation5 + $0x70] sm:$0xff]  ;;  %v96_v43 = vld [vmem:[#allocation7 + $0x60] sm:$0xff] }
  0x42   :  { %709 = vmatpush3.bf16.msra.mxu1 %v1078_v18  ;;  %v82_v41 = vld [vmem:[#allocation5 + $0x78] sm:$0xff]  ;;  %v720_v42 = vpack.c.bf16 %v95_v38, %v94_v37  ;;  %v97_v44 = vld [vmem:[#allocation7 + $0x68] sm:$0xff]  ;;  %v98_v48 = vld [vmem:[#allocation7 + $0x70] sm:$0xff] }
  0x43   :  { %710 = vmatprep.subr.bf16.mxu1 %v965_v0  ;;  %v702_v45 = vpack.c.bf16 %v82_v41, %v81_v40  ;;  %v723_v46 = vpack.c.bf16 %v97_v44, %v96_v43  ;;  %v66_v47 = vld [vmem:[#allocation2] sm:$0xff] }
  0x44   :  { %688 = vmatpush3.bf16.msra.mxu0 %v1072_v14  ;;  %v99_v49 = vld [vmem:[#allocation7 + $0x78] sm:$0xff] }
  0x45   :  { %689 = vmatprep.subr.bf16.mxu0 %v965_v0  ;;  %v726_v50 = vpack.c.bf16 %v99_v49, %v98_v48  ;;  %v468_v51 = vld [vmem:[%s1187_s2] ss:$0 sm:$0xff] }
  0x46   :  { %712 = vmatpush3.bf16.msra.mxu1 %v1084_v24  ;;  %v1133_v56 = vld [vmem:[%s1189_s4] ss:$0 sm:$0xff]  ;;  %s968_s4 = smov [#allocation9]  }
  0x47   :  { %713 = vmatprep.subr.bf16.mxu1 %v965_v0  ;;  %s427_s21 = sshll.u32 %s968_s4, 4  ;;  %s428_s21 = int_to_ptr.vmem [resolvable:$true] %s427_s21 }
  0x48   :  { %691 = vmatpush3.bf16.msra.mxu0 %v690_v21  ;;  %s862_s24 = scalar_lea.vmem %s428_s21, 128  ;;  %p867_p11 = scmp.lt.s32.totalorder %s428_s21, %s428_s21 }
  0x49   :  { %692 = vmatprep.subr.bf16.mxu0 %v965_v0  ;;  %p863_p10 = scmp.ne.s32.totalorder %s428_s21, %s862_s24  ;;  %p868_p12 = scmp.lt.s32.totalorder %s862_s24, %s862_s24 }
  0x4a   :  { %715 = vmatpush3.bf16.msra.mxu1 %v1089_v30 }
  0x4b   :  { %716 = vmatprep.subr.bf16.mxu1 %v965_v0  ;;  %p869_p13 = por %p868_p12, %p867_p11 }
  0x4c   :  { %694 = vmatpush3.bf16.msra.mxu0 %v693_v27 }
  0x4d   :  { %695 = vmatprep.subr.bf16.mxu0 %v965_v0  ;;  %p870_p0 = pnand %p869_p13, %p863_p10 }
  0x4e   :  { %718 = vmatpush3.bf16.msra.mxu1 %v717_v36 }
  0x4f   :  { %719 = vmatprep.subr.bf16.mxu1 %v965_v0 }
  0x50   :  { %697 = vmatpush3.bf16.msra.mxu0 %v696_v33 }
  0x51   :  { %698 = vmatprep.subr.bf16.mxu0 %v965_v0 }
  0x52   :  { %721 = vmatpush3.bf16.msra.mxu1 %v720_v42 }
  0x53   :  { %722 = vmatprep.subr.bf16.mxu1 %v965_v0 }
  0x54   :  { %700 = vmatpush3.bf16.msra.mxu0 %v699_v39 }
  0x55   :  { %701 = vmatprep.subr.bf16.mxu0 %v965_v0 }
  0x56   :  { %724 = vmatpush3.bf16.msra.mxu1 %v723_v46 }
  0x57   :  { %725 = vmatprep.subr.bf16.mxu1 %v965_v0 }
  0x58   :  { %703 = vmatpush3.bf16.msra.mxu0 %v702_v45 }
  0x59   :  { %728 = vmatprep.subr.bf16.mxu0 %v965_v0 }
  0x5a   :  { %727 = vmatpush3.bf16.msra.mxu1 %v726_v50 }
  0x5b   :  { %573 = vmatmul.mubr.f32.vlgmr.msra.gmra.mrb[0].mxu0 %v66_v47  ;;  %752 = vmatprep.subr.bf16.mxu1 %v965_v0 }
  0x5c   :  { %730 = vmatpush3.bf16.msra.mxu0 %v1065_v5  ;;  %642 = vmatprep.mubr.msk.f32.mxu0 %vm966_vm0, %v967_v1 }
  0x5d   :  { %731 = vmatprep.subr.bf16.mxu0 %v965_v0 }
  0x60   :  { %733 = vmatpush3.bf16.msra.mxu0 %v1068_v7 }
  0x61   :  { %734 = vmatprep.subr.bf16.mxu0 %v965_v0 }
  0x64   :  { %736 = vmatpush3.bf16.msra.mxu0 %v1072_v14 }
  0x65   :  { %737 = vmatprep.subr.bf16.mxu0 %v965_v0 }
  0x68   :  { %739 = vmatpush3.bf16.msra.mxu0 %v690_v21 }
  0x69   :  { %740 = vmatprep.subr.bf16.mxu0 %v965_v0 }
  0x6c   :  { %742 = vmatpush3.bf16.msra.mxu0 %v693_v27 }
  0x6d   :  { %743 = vmatprep.subr.bf16.mxu0 %v965_v0 }
  0x70   :  { %745 = vmatpush3.bf16.msra.mxu0 %v696_v33 }
  0x71   :  { %746 = vmatprep.subr.bf16.mxu0 %v965_v0 }
  0x74   :  { %748 = vmatpush3.bf16.msra.mxu0 %v699_v39 }
  0x75   :  { %749 = vmatprep.subr.bf16.mxu0 %v965_v0 }
  0x78   :  { %751 = vmatpush3.bf16.msra.mxu0 %v702_v45 }
 0x12e   :  { %v173_v52 = vpop.f32.mrb[0].mxu0 }
 0x12f   :  { %v174_v53 = vadd.f32 %v468_v51, %v173_v52  ;;  %v574_v54 = vpop.f32.mrb[1].mxu0 }
 0x131   :  { %v177_v55 = vmax.f32 %v174_v53, 0.0 }
 0x133   :  { %178 = vst [vmem:[#allocation8] sm:$0xff] %v177_v55  ;;  %608 = vmatmul.mubr.f32.vlgmr.msra.gmra.mrb[0].mxu1 %v177_v55 }
 0x134   :  { %754 = vmatpush3.bf16.msra.mxu1 %v1074_v15  ;;  %677 = vmatprep.mubr.msk.f32.mxu1 %vm966_vm0, %v967_v1 }
 0x135   :  { %755 = vmatprep.subr.bf16.mxu1 %v965_v0 }
 0x138   :  { %757 = vmatpush3.bf16.msra.mxu1 %v1078_v18 }
 0x139   :  { %758 = vmatprep.subr.bf16.mxu1 %v965_v0 }
 0x13c   :  { %760 = vmatpush3.bf16.msra.mxu1 %v1084_v24 }
 0x13d   :  { %761 = vmatprep.subr.bf16.mxu1 %v965_v0 }
 0x140   :  { %763 = vmatpush3.bf16.msra.mxu1 %v1089_v30 }
 0x141   :  { %764 = vmatprep.subr.bf16.mxu1 %v965_v0 }
 0x144   :  { %766 = vmatpush3.bf16.msra.mxu1 %v717_v36 }
 0x145   :  { %767 = vmatprep.subr.bf16.mxu1 %v965_v0 }
 0x148   :  { %769 = vmatpush3.bf16.msra.mxu1 %v720_v42 }
 0x149   :  { %770 = vmatprep.subr.bf16.mxu1 %v965_v0 }
 0x14c   :  { %772 = vmatpush3.bf16.msra.mxu1 %v723_v46 }
 0x14d   :  { %773 = vmatprep.subr.bf16.mxu1 %v965_v0 }
 0x150   :  { %775 = vmatpush3.bf16.msra.mxu1 %v726_v50 }
 0x206   :  { %v251_v57 = vpop.f32.mrb[0].mxu1 }
 0x207   :  { %v252_v58 = vadd.f32 %v1133_v56, %v251_v57  ;;  %v609_v59 = vpop.f32.mrb[1].mxu1 }
 0x209   :  { %v470_v60 = vmul.f32 -1.442695, %v252_v58 }
 0x20b   :  { %788 = vpow2.f32 %v470_v60 }
 0x215   :  { %v789_v61 = vpop.eup %788 }
 0x216   :  { %v258_v62 = vadd.f32 1.0, %v789_v61 }
 0x218   :  { %790 = vrcp.f32 %v258_v62 }
 0x222   :  { %v791_v63 = vpop.eup %790 }
 0x223   :  { %261 = vst [vmem:[#allocation11] sm:$0xff] %v791_v63  ;;  %643 = vmatmul.mubr.f32.vlgmr.msra.gmra.mrb[2].mxu0 %v791_v63 }
 0x2f6   :  { %v328_v1 = vpop.f32.mrb[2].mxu0 }
 0x2f7   :  { %v329_v0 = vadd.f32 %v468_v51, %v328_v1  ;;  %v644_v2 = vpop.f32.mrb[3].mxu0 }
 0x2f9   :  { %v332_v3 = vmax.f32 %v329_v0, 0.0 }
 0x2fb   :  { %333 = vst [vmem:[#allocation9] sm:$0xff] %v332_v3  ;;  %678 = vmatmul.mubr.f32.vlgmr.msra.gmra.mrb[2].mxu1 %v332_v3 }
 0x2fc   :  { %873 = shalt.err (!%p870_p0)
}
 0x2fd   :  { %s874_s27 = scalar_lea.hbm %s1191_s6, 128 }
 0x2fe   :  { %p875_p1 = scmp.ne.s32.totalorder %s1191_s6, %s874_s27  ;;  %p878_p2 = scmp.lt.u32.totalorder %s874_s27, %s1191_s6 }
 0x300   :  { %p880_p3 = pnand %p878_p2, %p875_p1 }
 0x302   :  { %883 = shalt.err (!%p880_p3)
}
 0x303   :  { %430 = dma.vmem_to_hbm [thread:$0]  %s428_s21, 128, %s1191_s6, [#allocation10]  }
 0x304   :  { %s884_s11 = scalar_lea.vmem %s418_s23, 128  ;;  %p889_p5 = scmp.lt.s32.totalorder %s418_s23, %s418_s23 }
 0x305   :  { %p885_p4 = scmp.ne.s32.totalorder %s418_s23, %s884_s11  ;;  %p890_p6 = scmp.lt.s32.totalorder %s884_s11, %s884_s11 }
 0x307   :  { %p891_p7 = por %p890_p6, %p889_p5 }
 0x309   :  { %p892_p8 = pnand %p891_p7, %p885_p4 }
 0x30b   :  { %895 = shalt.err (!%p892_p8)
}
 0x30c   :  { %s896_s14 = scalar_lea.hbm %s1190_s5, 128 }
 0x30d   :  { %p897_p9 = scmp.ne.s32.totalorder %s1190_s5, %s896_s14  ;;  %p900_p10 = scmp.lt.u32.totalorder %s896_s14, %s1190_s5 }
 0x30f   :  { %p902_p11 = pnand %p900_p10, %p897_p9 }
 0x311   :  { %905 = shalt.err (!%p902_p11)
}
 0x312   :  { %420 = dma.vmem_to_hbm [thread:$0]  %s418_s23, 128, %s1190_s5, [#allocation4]  }
 0x313   :  { %s970_s3 = smov [#allocation11]  }
 0x314   :  { %s437_s15 = sshll.u32 %s970_s3, 4  ;;  %s438_s15 = int_to_ptr.vmem [resolvable:$true] %s437_s15 }
 0x315   :  { %s906_s2 = scalar_lea.vmem %s438_s15, 128  ;;  %p911_p13 = scmp.lt.s32.totalorder %s438_s15, %s438_s15 }
 0x316   :  { %p907_p12 = scmp.ne.s32.totalorder %s438_s15, %s906_s2  ;;  %p912_p0 = scmp.lt.s32.totalorder %s906_s2, %s906_s2 }
 0x318   :  { %p913_p1 = por %p912_p0, %p911_p13 }
 0x31a   :  { %p914_p2 = pnand %p913_p1, %p907_p12 }
 0x31c   :  { %917 = shalt.err (!%p914_p2)
}
 0x31d   :  { %s918_s21 = scalar_lea.hbm %s1192_s7, 128 }
 0x31e   :  { %p919_p3 = scmp.ne.s32.totalorder %s1192_s7, %s918_s21  ;;  %p922_p4 = scmp.lt.u32.totalorder %s918_s21, %s1192_s7 }
 0x320   :  { %p924_p5 = pnand %p922_p4, %p919_p3 }
 0x322   :  { %927 = shalt.err (!%p924_p5)
}
 0x323   :  { %440 = dma.vmem_to_hbm [thread:$0]  %s438_s15, 128, %s1192_s7, [#allocation10]  }
 0x324   :  { %s971_s27 = smov [#allocation12]  }
 0x325   :  { %s447_s29 = sshll.u32 %s971_s27, 4  ;;  %s448_s29 = int_to_ptr.vmem [resolvable:$true] %s447_s29 }
 0x326   :  { %s928_s30 = scalar_lea.vmem %s448_s29, 128  ;;  %p933_p7 = scmp.lt.s32.totalorder %s448_s29, %s448_s29 }
 0x327   :  { %p929_p6 = scmp.ne.s32.totalorder %s448_s29, %s928_s30  ;;  %p934_p8 = scmp.lt.s32.totalorder %s928_s30, %s928_s30 }
 0x329   :  { %p935_p9 = por %p934_p8, %p933_p7 }
 0x32b   :  { %p936_p10 = pnand %p935_p9, %p929_p6 }
 0x3ce   :  { %v400_v4 = vpop.f32.mrb[2].mxu1 }
 0x3cf   :  { %v401_v5 = vadd.f32 %v1133_v56, %v400_v4  ;;  %v679_v6 = vpop.f32.mrb[3].mxu1 }
 0x3d1   :  { %v471_v7 = vmul.f32 -1.442695, %v401_v5 }
 0x3d3   :  { %792 = vpow2.f32 %v471_v7 }
 0x3dd   :  { %v793_v8 = vpop.eup %792 }
 0x3de   :  { %v407_v9 = vadd.f32 1.0, %v793_v8 }
 0x3e0   :  { %794 = vrcp.f32 %v407_v9 }
 0x3ea   :  { %v795_v10 = vpop.eup %794 }
 0x3eb   :  { %410 = vst [vmem:[#allocation12] sm:$0xff] %v795_v10 }
 0x3ec   :  { %939 = shalt.err (!%p936_p10)
}
 0x3ed   :  { %s940_s28 = scalar_lea.hbm %s1193_s8, 128 }
 0x3ee   :  { %p941_p11 = scmp.ne.s32.totalorder %s1193_s8, %s940_s28  ;;  %p944_p12 = scmp.lt.u32.totalorder %s940_s28, %s1193_s8 }
 0x3f0   :  { %p946_p13 = pnand %p944_p12, %p941_p11 }
 0x3f2   :  { %949 = shalt.err (!%p946_p13)
}
 0x3f3   :  { %450 = dma.vmem_to_hbm [thread:$0]  %s448_s29, 128, %s1193_s8, [#allocation13]  }
 0x3f4   :  { %954 = dma.done.wait [#allocation4], 128  }
 0x3f5   :  { %955 = vsyncadd [#allocation4], 4294967168 }
 0x3f6   :  { %956 = dma.done.wait [#allocation10], 256  }
 0x3f7   :  { %957 = vsyncadd [#allocation10], 4294967040 }
 0x3f8   :  { %958 = dma.done.wait [#allocation13], 128  }
 0x3f9   :  { %959 = vsyncadd [#allocation13], 4294967168 }
 0x3fa   :  { %463 = vsyncpa [#allocation3], 1 }
 0x3fb   :  { %464 = vsyncpa [#allocation6], 1 }
 0x3fc   :  { %465 = vsyncpa [#allocation4], 1 }
 0x3fd   :  { %466 = vsyncpa [#allocation10], 1 }
 0x3fe   :  { %467 = vsyncpa [#allocation13], 1 }

</bundles_post_ra>
